<compile_context>
chip_gen: v7x
topology: tpu7x:2x2x1
jax: 0.10.0
libtpu: 0.0.40
codegen_flags: <defaults>
</compile_context>

<pallas_src>
import jax
import jax.numpy as jnp
from jax import lax
from jax.experimental import pallas as pl
from jax.experimental.pallas import tpu as pltpu


def _coattention_kernel(xq_ref, xr_ref, wqt_ref, bq_ref, wkt_ref, out_ref,
                        k_ref, v_ref):
    """One (batch, query-tile) step.

    xq_ref : [1, Cin, TQ]  query pixels, channels-first (native dtype)
    xr_ref : [1, Cin, Nk]  reference pixels (native dtype)
    wqt_ref/wkt_ref : [Ch, Cin]  transposed 1x1-conv weights (bf16)
    bq_ref : [Ch, 1]  query conv bias (f32)
    out_ref: [1, Cin, TQ]  attended features (lane-dense on query pixels)
    k_ref  : [Ch,  Nk] bf16 scratch  — projected K, reused across query tiles
    v_ref  : [Cin, Nk] bf16 scratch  — V cast once per batch
    """
    cdt = k_ref.dtype  # bf16 compute dtype for MXU operands

    # Hoisted per-batch work: project K and cast V exactly once (qi iterates innermost).
    @pl.when(pl.program_id(1) == 0)
    def _():
        xr = xr_ref[0].astype(cdt)                                            # [Cin, Nk]
        v_ref[...] = xr
        # bk bias intentionally dropped: q_i . bk is constant over the softmax axis.
        k_ref[...] = jnp.dot(wkt_ref[...], xr,
                             preferred_element_type=jnp.float32).astype(cdt)  # [Ch, Nk]

    # Q projection for this tile (bias add in f32, operands cast to bf16 for the MXU).
    xq = xq_ref[0].astype(cdt)                                                # [Cin, TQ]
    q = (jnp.dot(wqt_ref[...], xq, preferred_element_type=jnp.float32)
         + bq_ref[...]).astype(cdt)                                           # [Ch, TQ]

    # Attention scores: contract the shared Ch (sublane) axis directly, bf16 x bf16 -> f32.
    s = lax.dot_general(q, k_ref[...], (((0,), (0,)), ((), ())),
                        preferred_element_type=jnp.float32)                   # [TQ, Nk]

    # Stable softmax numerator (f32); normalization is deferred past the PV matmul.
    s = s - jnp.max(s, axis=-1, keepdims=True)
    p = jnp.exp(s)
    p_bf = p.astype(cdt)

    # Row sums as a ones-row matmul -> lands directly in [1, TQ] lane layout.
    ones_row = jnp.ones((1, p_bf.shape[1]), dtype=cdt)
    denom = lax.dot_general(ones_row, p_bf, (((1,), (1,)), ((), ())),
                            preferred_element_type=jnp.float32)               # [1, TQ]

    # Unnormalized attended features: out[c, i] = sum_j V[c, j] * p[i, j]  (NT matmul).
    out = lax.dot_general(v_ref[...], p_bf, (((1,), (1,)), ((), ())),
                          preferred_element_type=jnp.float32)                 # [Cin, TQ]
    out = out * pl.reciprocal(denom, approx=True)                             # broadcast over Cin
    out_ref[0] = out.astype(out_ref.dtype)


def _vmem_limit_bytes():
    """Generation-aware VMEM request (64 MiB on v5e/v6e, ~48 MiB on v7x)."""
    cap = 128 * 1024 * 1024
    try:
        cap = int(pltpu.get_tpu_info().vmem_capacity_bytes)
    except Exception:
        pass
    return min(64 * 1024 * 1024, (cap * 3) // 4)


def _pick_q_tile(nq_pad, nk, cin, ch, in_itemsize, vmem_budget):
    """Largest 128-multiple query tile whose per-step VMEM footprint fits comfortably."""
    # Persistent across qi: xr block (double-buffered, input dtype) + K/V scratches (bf16).
    fixed = 2 * cin * nk * in_itemsize + (ch + cin) * nk * 2
    for t in (1024, 512, 384, 256, 128):
        if nq_pad % t:
            continue
        per_step = (2 * cin * t * in_itemsize   # xq tile, double-buffered
                    + 2 * cin * t * 4           # out tile, double-buffered
                    + 2 * t * nk * 4            # s and p (f32) live together
                    + ch * t * 4)               # q projection (f32)
        if fixed + per_step <= vmem_budget // 2:
            return t
    return 128  # nq_pad is always a multiple of 128


def coattention_layer(query_features, reference_features, wq, bq, wk, bk=None,
                      *, compute_dtype=jnp.bfloat16):
    """query_features: [B, Cin, H1, W1]; reference_features: [B, Cin, H2, W2].
    wq, wk: [Cin, Ch]; bq, bk: [Ch].  Returns [B, Cin, H1, W1] (same dtype as query).
    bk is accepted for API parity but unused (exact no-op under the softmax)."""
    del bk
    B, Cin, H1, W1 = query_features.shape
    _, _, H2, W2 = reference_features.shape
    Nq, Nk = H1 * W1, H2 * W2
    Ch = wq.shape[1]

    # Channels-first flatten: pure reshape of NCHW. Inputs stay in their native dtype;
    # the bf16 cast for the MXU happens in VMEM inside the kernel.
    xq = query_features.reshape(B, Cin, Nq)
    xr = reference_features.reshape(B, Cin, Nk)

    # Pad query pixels up to a multiple of 128 so tiles stay lane-dense (unmasked vst)
    # and the [TQ, Nk] f32 scores intermediate never degenerates to TQ == Nq.
    nq_pad = ((Nq + 127) // 128) * 128
    if nq_pad != Nq:
        xq = jnp.pad(xq, ((0, 0), (0, 0), (0, nq_pad - Nq)))

    # Tiny weight transposes in the wrapper so in-kernel projections are plain NN matmuls.
    wqt = wq.T.astype(compute_dtype)                 # [Ch, Cin]
    wkt = wk.T.astype(compute_dtype)                 # [Ch, Cin]
    bq2 = bq.reshape(Ch, 1).astype(jnp.float32)      # [Ch, 1]

    vmem_limit = _vmem_limit_bytes()
    tq = _pick_q_tile(nq_pad, Nk, Cin, Ch, query_features.dtype.itemsize, vmem_limit)
    n_qt = nq_pad // tq

    # TODO(synk): for very large reference maps (Cin*Nk no longer VMEM-friendly, esp. on
    # v7x's 64 MiB), stream K/V in Nk blocks with an online-softmax accumulator and
    # single-buffer the xr block (pipeline_mode=pl.Buffered(1)).
    # TODO(synk): for B == 1 on v7x (2 TensorCores) prefer a qi-'parallel' split
    # (re-projecting K per tile) so both cores get work.
    out = pl.pallas_call(
        _coattention_kernel,
        out_shape=jax.ShapeDtypeStruct((B, Cin, nq_pad), query_features.dtype),
        grid_spec=pltpu.PrefetchScalarGridSpec(
            num_scalar_prefetch=0,
            grid=(B, n_qt),
            in_specs=[
                pl.BlockSpec((1, Cin, tq), lambda b, qi: (b, 0, qi)),   # xq tile
                pl.BlockSpec((1, Cin, Nk), lambda b, qi: (b, 0, 0)),    # xr (K/V source)
                pl.BlockSpec((Ch, Cin), lambda b, qi: (0, 0)),          # wq^T (bf16)
                pl.BlockSpec((Ch, 1), lambda b, qi: (0, 0)),            # bq  (f32)
                pl.BlockSpec((Ch, Cin), lambda b, qi: (0, 0)),          # wk^T (bf16)
            ],
            out_specs=pl.BlockSpec((1, Cin, tq), lambda b, qi: (b, 0, qi)),
            scratch_shapes=[
                pltpu.VMEM((Ch, Nk), compute_dtype),    # hoisted K, reused across qi
                pltpu.VMEM((Cin, Nk), compute_dtype),   # V cast to bf16 once per batch
            ],
        ),
        compiler_params=pltpu.CompilerParams(
            dimension_semantics=("parallel", "arbitrary"),
            vmem_limit_bytes=vmem_limit,
        ),
    )(xq, xr, wqt, bq2, wkt)

    # [B, Cin, nq_pad] -> drop padding -> already-flattened NCHW -> free reshape back.
    return out[:, :, :Nq].reshape(B, Cin, H1, W1)


def _reference_coattention(query_features, reference_features, wq, bq, wk, bk):
    """Pure-JAX reference mirroring the PyTorch forward pass (f32, includes bk)."""
    B, Cin, H1, W1 = query_features.shape
    _, _, H2, W2 = reference_features.shape
    Q = jnp.einsum("bchw,cd->bdhw", query_features, wq) + bq[None, :, None, None]
    K = jnp.einsum("bchw,cd->bdhw", reference_features, wk) + bk[None, :, None, None]
    V = reference_features.reshape(B, Cin, H2 * W2)
    attn = jnp.einsum("bcij,bckl->bijkl", Q, K).reshape(B, H1, W1, H2 * W2)
    attn = jax.nn.softmax(attn, axis=3)
    return jnp.einsum("bijp,bcp->bcij", attn, V)


if __name__ == "__main__":
    # Small, deterministic shapes consistent with the module (Cin -> Ch reduction).
    B, Cin, Ch = 2, 8, 32
    H1 = W1 = 8
    H2 = W2 = 8

    key = jax.random.PRNGKey(0)
    k1, k2, k3, k4, k5, k6 = jax.random.split(key, 6)

    query_features = jax.random.normal(k1, (B, Cin, H1, W1), jnp.float32) * 0.1
    reference_features = jax.random.normal(k2, (B, Cin, H2, W2), jnp.float32) * 0.1

    # 1x1 conv == [Cin, Ch] weight + [Ch] bias.
    wq = jax.random.normal(k3, (Cin, Ch), jnp.float32) * 0.1
    bq = jax.random.normal(k4, (Ch,), jnp.float32) * 0.1
    wk = jax.random.normal(k5, (Cin, Ch), jnp.float32) * 0.1
    bk = jax.random.normal(k6, (Ch,), jnp.float32) * 0.1

    out = coattention_layer(query_features, reference_features, wq, bq, wk, bk)
    out = jax.block_until_ready(out)

    ref = _reference_coattention(query_features, reference_features, wq, bq, wk, bk)
    ref = jax.block_until_ready(ref)

    assert out.shape == (B, Cin, H1, W1), out.shape
    assert jnp.allclose(out, ref, rtol=2e-2, atol=2e-2), float(jnp.max(jnp.abs(out - ref)))

    print("KERNEL_OK")
</pallas_src>

<mosaic_0001>
module attributes {stable_mosaic.version = 11 : i64} {
  func.func @_coattention_kernel(%arg0: i32, %arg1: i32, %arg2: memref<1x8x128xf32, #tpu.memory_space<vmem>>, %arg3: memref<1x8x64xf32, #tpu.memory_space<vmem>>, %arg4: memref<32x8xbf16, #tpu.memory_space<vmem>>, %arg5: memref<32x1xf32, #tpu.memory_space<vmem>>, %arg6: memref<32x8xbf16, #tpu.memory_space<vmem>>, %arg7: memref<1x8x128xf32, #tpu.memory_space<vmem>>, %arg8: memref<32x64xbf16, #tpu.memory_space<vmem>>, %arg9: memref<8x64xbf16, #tpu.memory_space<vmem>>) attributes {dimension_semantics = [#tpu.dimension_semantics<parallel>, #tpu.dimension_semantics<arbitrary>], iteration_bounds = array<i64: 2, 1>, scalar_prefetch = 0 : i64, scratch_operands = 2 : i64, tpu.core_type = #tpu.core_type<tc>, window_params = [{transform_indices = @transform_0, window_bounds = array<i64: 1, 8, 128>}, {transform_indices = @transform_1, window_bounds = array<i64: 1, 8, 64>}, {pipeline_mode = #tpu.pipeline_mode<synchronous>, transform_indices = @transform_2, window_bounds = array<i64: 32, 8>}, {pipeline_mode = #tpu.pipeline_mode<synchronous>, transform_indices = @transform_3, window_bounds = array<i64: 32, 1>}, {pipeline_mode = #tpu.pipeline_mode<synchronous>, transform_indices = @transform_4, window_bounds = array<i64: 32, 8>}, {transform_indices = @transform_5, window_bounds = array<i64: 1, 8, 128>}]} {
    %c0_i32 = arith.constant 0 : i32
    %0 = arith.cmpi eq, %arg1, %c0_i32 : i32
    %1 = arith.extui %0 : i1 to i32
    %c0_i32_0 = arith.constant 0 : i32
    %2 = arith.cmpi ne, %1, %c0_i32_0 : i32
    scf.if %2 {
      %c0_19 = arith.constant 0 : index
      %c0_20 = arith.constant 0 : index
      %c0_21 = arith.constant 0 : index
      %30 = vector.load %arg3[%c0_19, %c0_20, %c0_21] : memref<1x8x64xf32, #tpu.memory_space<vmem>>, vector<1x8x64xf32>
      %31 = vector.shape_cast %30 : vector<1x8x64xf32> to vector<8x64xf32>
      %32 = arith.truncf %31 : vector<8x64xf32> to vector<8x64xbf16>
      %c0_22 = arith.constant 0 : index
      %c0_23 = arith.constant 0 : index
      %33 = vector.load %arg9[%c0_22, %c0_23] : memref<8x64xbf16, #tpu.memory_space<vmem>>, vector<8x64xbf16>
      tpu.vector_store %arg9[%c0_22, %c0_23], %32 {strides = array<i32>} : memref<8x64xbf16, #tpu.memory_space<vmem>>, vector<8x64xbf16>,
      %c0_24 = arith.constant 0 : index
      %c0_25 = arith.constant 0 : index
      %34 = vector.load %arg6[%c0_24, %c0_25] : memref<32x8xbf16, #tpu.memory_space<vmem>>, vector<32x8xbf16>
      %cst_26 = arith.constant dense<0.000000e+00> : vector<32x64xf32>
      %35 = tpu.matmul %34, %32, %cst_26 {dimension_numbers = #tpu.dot_dimension_numbers<[1], [0], [0], [1], [0, 0, 1, 1], [], []>} : vector<32x8xbf16>, vector<8x64xbf16>, vector<32x64xf32> -> vector<32x64xf32>
      %36 = arith.truncf %35 : vector<32x64xf32> to vector<32x64xbf16>
      %c0_27 = arith.constant 0 : index
      %c0_28 = arith.constant 0 : index
      %37 = vector.load %arg8[%c0_27, %c0_28] : memref<32x64xbf16, #tpu.memory_space<vmem>>, vector<32x64xbf16>
      tpu.vector_store %arg8[%c0_27, %c0_28], %36 {strides = array<i32>} : memref<32x64xbf16, #tpu.memory_space<vmem>>, vector<32x64xbf16>,
    } else {
    }
    %c0 = arith.constant 0 : index
    %c0_1 = arith.constant 0 : index
    %c0_2 = arith.constant 0 : index
    %3 = vector.load %arg2[%c0, %c0_1, %c0_2] : memref<1x8x128xf32, #tpu.memory_space<vmem>>, vector<1x8x128xf32>
    %4 = vector.shape_cast %3 : vector<1x8x128xf32> to vector<8x128xf32>
    %5 = arith.truncf %4 : vector<8x128xf32> to vector<8x128xbf16>
    %c0_3 = arith.constant 0 : index
    %c0_4 = arith.constant 0 : index
    %6 = vector.load %arg4[%c0_3, %c0_4] : memref<32x8xbf16, #tpu.memory_space<vmem>>, vector<32x8xbf16>
    %cst = arith.constant dense<0.000000e+00> : vector<32x128xf32>
    %7 = tpu.matmul %6, %5, %cst {dimension_numbers = #tpu.dot_dimension_numbers<[1], [0], [0], [1], [0, 0, 1, 1], [], []>} : vector<32x8xbf16>, vector<8x128xbf16>, vector<32x128xf32> -> vector<32x128xf32>
    %c0_5 = arith.constant 0 : index
    %c0_6 = arith.constant 0 : index
    %8 = vector.load %arg5[%c0_5, %c0_6] : memref<32x1xf32, #tpu.memory_space<vmem>>, vector<32x1xf32>
    %9 = vector.broadcast %8 : vector<32x1xf32> to vector<32x128xf32>
    %10 = arith.addf %7, %9 : vector<32x128xf32>
    %11 = arith.truncf %10 : vector<32x128xf32> to vector<32x128xbf16>
    %c0_7 = arith.constant 0 : index
    %c0_8 = arith.constant 0 : index
    %12 = vector.load %arg8[%c0_7, %c0_8] : memref<32x64xbf16, #tpu.memory_space<vmem>>, vector<32x64xbf16>
    %cst_9 = arith.constant dense<0.000000e+00> : vector<128x64xf32>
    %13 = tpu.matmul %11, %12, %cst_9 {dimension_numbers = #tpu.dot_dimension_numbers<[0], [0], [1], [1], [0, 1, 1, 1], [], []>} : vector<32x128xbf16>, vector<32x64xbf16>, vector<128x64xf32> -> vector<128x64xf32>
    %cst_10 = arith.constant dense<0xFF800000> : vector<128xf32>
    %14 = vector.multi_reduction <maximumf>, %13, %cst_10 [1] : vector<128x64xf32> to vector<128xf32>
    %15 = vector.shape_cast %14 : vector<128xf32> to vector<128x1xf32>
    %16 = vector.broadcast %15 : vector<128x1xf32> to vector<128x64xf32>
    %17 = arith.subf %13, %16 : vector<128x64xf32>
    %18 = math.exp %17 : vector<128x64xf32>
    %19 = arith.truncf %18 : vector<128x64xf32> to vector<128x64xbf16>
    %cst_11 = arith.constant 1.000000e+00 : bf16
    %20 = vector.broadcast %cst_11 : bf16 to vector<1x64xbf16>
    %cst_12 = arith.constant dense<0.000000e+00> : vector<1x128xf32>
    %21 = tpu.matmul %20, %19, %cst_12 {dimension_numbers = #tpu.dot_dimension_numbers<[1], [1], [0], [0], [0, 0, 1, 0], [], []>} : vector<1x64xbf16>, vector<128x64xbf16>, vector<1x128xf32> -> vector<1x128xf32>
    %c0_13 = arith.constant 0 : index
    %c0_14 = arith.constant 0 : index
    %22 = vector.load %arg9[%c0_13, %c0_14] : memref<8x64xbf16, #tpu.memory_space<vmem>>, vector<8x64xbf16>
    %cst_15 = arith.constant dense<0.000000e+00> : vector<8x128xf32>
    %23 = tpu.matmul %22, %19, %cst_15 {dimension_numbers = #tpu.dot_dimension_numbers<[1], [1], [0], [0], [0, 0, 1, 0], [], []>} : vector<8x64xbf16>, vector<128x64xbf16>, vector<8x128xf32> -> vector<8x128xf32>
    %24 = tpu.reciprocal %21 {approx = true} : vector<1x128xf32> -> vector<1x128xf32>
    %25 = vector.broadcast %24 : vector<1x128xf32> to vector<8x128xf32>
    %26 = arith.mulf %23, %25 : vector<8x128xf32>
    %c0_16 = arith.constant 0 : index
    %c0_17 = arith.constant 0 : index
    %c0_18 = arith.constant 0 : index
    %27 = vector.load %arg7[%c0_16, %c0_17, %c0_18] : memref<1x8x128xf32, #tpu.memory_space<vmem>>, vector<1x8x128xf32>
    %28 = vector.shape_cast %27 : vector<1x8x128xf32> to vector<8x128xf32>
    %29 = vector.shape_cast %26 : vector<8x128xf32> to vector<1x8x128xf32>
    tpu.vector_store %arg7[%c0_16, %c0_17, %c0_18], %29 {strides = array<i32>} : memref<1x8x128xf32, #tpu.memory_space<vmem>>, vector<1x8x128xf32>,
    return
  }
  func.func @transform_0(%arg0: i32, %arg1: i32) -> (i32, i32, i32) {
    %c0_i32 = arith.constant 0 : i32
    %c0_i32_0 = arith.constant 0 : i32
    return %arg0, %c0_i32, %arg1 : i32, i32, i32
  }
  func.func @transform_1(%arg0: i32, %arg1: i32) -> (i32, i32, i32) {
    %c0_i32 = arith.constant 0 : i32
    %c0_i32_0 = arith.constant 0 : i32
    %c0_i32_1 = arith.constant 0 : i32
    return %arg0, %c0_i32, %c0_i32_0 : i32, i32, i32
  }
  func.func @transform_2(%arg0: i32, %arg1: i32) -> (i32, i32) {
    %c0_i32 = arith.constant 0 : i32
    %c0_i32_0 = arith.constant 0 : i32
    %c0_i32_1 = arith.constant 0 : i32
    return %c0_i32, %c0_i32_0 : i32, i32
  }
  func.func @transform_3(%arg0: i32, %arg1: i32) -> (i32, i32) {
    %c0_i32 = arith.constant 0 : i32
    %c0_i32_0 = arith.constant 0 : i32
    %c0_i32_1 = arith.constant 0 : i32
    return %c0_i32, %c0_i32_0 : i32, i32
  }
  func.func @transform_4(%arg0: i32, %arg1: i32) -> (i32, i32) {
    %c0_i32 = arith.constant 0 : i32
    %c0_i32_0 = arith.constant 0 : i32
    %c0_i32_1 = arith.constant 0 : i32
    return %c0_i32, %c0_i32_0 : i32, i32
  }
  func.func @transform_5(%arg0: i32, %arg1: i32) -> (i32, i32, i32) {
    %c0_i32 = arith.constant 0 : i32
    %c0_i32_0 = arith.constant 0 : i32
    return %arg0, %c0_i32, %arg1 : i32, i32, i32
  }
}

</mosaic_0001>

<bundles_post_ra>
// kernel: tpu_custom_call.1
= control target key start
LH: loop header
LB: loop body
LE: loop exit
PB: predicated region body
PF: predicated region fallthrough
CT: control target
= control target key end

     0   :  { %s2048_s0 = inlined_call_operand.hbm [shape: f32[2,8,128], index: 0, kind: input, shape index: {}]   ;;  %s2049_s1 = inlined_call_operand.hbm [shape: f32[2,8,64], index: 1, kind: input, shape index: {}]   ;;  %s2050_s2 = inlined_call_operand.hbm [shape: bf16[32,8], index: 2, kind: input, shape index: {}]   ;;  %s2051_s3 = inlined_call_operand.hbm [shape: f32[32,1], index: 3, kind: input, shape index: {}]   ;;  %s2052_s4 = inlined_call_operand.hbm [shape: bf16[32,8], index: 4, kind: input, shape index: {}]   ;;  %s2053_s5 = inlined_call_operand.hbm [shape: f32[2,8,128], index: 5, kind: output, shape index: {}]  }
   0x1   :  { %2061 = sst [smem:[#allocation20_spill]] %s2050_s2 }
   0x2   :  { %2062 = sst [smem:[#allocation21_spill]] %s2051_s3 }
   0x3   :  { %2063 = sst [smem:[#allocation22_spill]] %s2052_s4 }
   0x4   :  { %10 = vsyncpa [#allocation5], 0 }
   0x5   :  { %12 = vsyncpa [#allocation5 + $0x1], 0 }
   0x6   :  { %13 = vsyncpa [#allocation8], 0 }
   0x7   :  { %15 = vsyncpa [#allocation8 + $0x1], 0 }
   0x8   :  { %16 = vsyncpa [#allocation11], 0 }
   0x9   :  { %17 = vsyncpa [#allocation6], 0 }
   0xa   :  { %19 = vsyncpa [#allocation6 + $0x1], 0  ;;  %s1615_s18 = smov 0   ;;  %s1617_s19 = smov 0  }
   0xb   :  { %s1619_s20 = smov 0   ;;  %s1621_s21 = smov 0  }
   0xc   :  { %s1623_s22 = smov 0   ;;  %s1625_s23 = smov 0  }
   0xd LB: > { %s1646_s24 = sadd.s32 4294967295, %s1569_s23   ;;  %s1038_s25 = sadd.s32 4294967294, %s1569_s23   ;;  %s1569_s23 = sphi %s1625_s23, %s25_s23   ;;  %s1565_s22 = sphi %s1623_s22, %s2093_s22   ;;  %s1561_s21 = sphi %s1621_s21, %s2092_s21   ;;  %s1557_s20 = sphi %s1619_s20, %s2091_s20   ;;  %s1553_s19 = sphi %s1617_s19, %s2090_s19   ;;  %s1549_s18 = sphi %s1615_s18, %s2089_s18  }
   0xe   : > { %p59_p0 = scmp.ne.s32.totalorder %s1553_s19, %s1549_s18  ;;  %p2054_p1 = scmp.eq.s32.totalorder %s1646_s24, 0 }
   0xf   : > { %p180_p3 = scmp.eq.s32.totalorder %s1038_s25, 1  ;;  %p1039_p5 = scmp.ge.s32.totalorder %s1569_s23, 1 }
  0x10   : > { %p1655_p4 = por %p2054_p1, %p59_p0  ;;  %p187_p7 = scmp.lt.s32.totalorder %s1569_s23, 3 }
  0x11   : > { %p1660_p6 = por %p180_p3, %p59_p0  ;;  %s1571_s29 = smov [#allocation9]  }
  0x12   : > { %s2064_s26 = scalar_select %p1655_p4, 1, 0 }
  0x13   : > { %s2065_s27 = scalar_select %p1660_p6, 1, 0 }
  0x14   : > { %p1665_p8 = pnand %p1039_p5, %p187_p7  ;;  %s199_s30 = sshll.u32 %s1571_s29, 4  ;;  %s1669_s30 = int_to_ptr.vmem [resolvable:$true] %s199_s30 }
  0x15   : > { %s1572_s7 = smov [#allocation10]   ;;  %s2068_s2 = sld [smem:[#allocation20_spill]] }
  0x16   : > { %s2066_s28 = scalar_select %p1665_p8, 1, 0 }
  0x17   : > { %p1203_p9 = pneg %p1665_p8  ;;  %s212_s8 = sshll.u32 %s1572_s7, 4  ;;  %s1680_s8 = int_to_ptr.vmem [resolvable:$true] %s212_s8 }
  0x19   : > { %p1676_p11 = pnand %p1203_p9, %p2054_p1 }
  0x1b   : > { %s1331_s11 = scalar_lea.hbm %s2068_s2, 256  ;;  %p1690_p13 = pneg %p1676_p11 }
  0x1c   : > { %p1332_p12 = scmp.ne.s32.totalorder %s2068_s2, %s1331_s11  ;;  %p1338_p5 = scmp.lt.u32.totalorder %s1331_s11, %s2068_s2 }
  0x1e   : > { %p1334_p0 = pnand %p1690_p13, %p1332_p12 }
  0x20   : > { %p1335_p3 = pneg %p1334_p0 }
  0x22   : > { %p1340_p7 = pnand %p1338_p5, %p1335_p3 }
  0x24   : > { %1343 = shalt.err (!%p1340_p7)
}
  0x25   : > { %s1344_s17 = scalar_lea.vmem %s1669_s30, 256  ;;  %p1352_p2 = scmp.lt.s32.totalorder %s1669_s30, %s1669_s30 }
  0x26   : > { %p1345_p9 = scmp.ne.s32.totalorder %s1669_s30, %s1344_s17  ;;  %p1353_p6 = scmp.lt.s32.totalorder %s1344_s17, %s1344_s17 }
  0x28   : > { %p1347_p10 = pnand %p1345_p9, %p1690_p13  ;;  %p1354_p12 = por %p1353_p6, %p1352_p2 }
  0x2a   : > { %p1348_p1 = pneg %p1347_p10 }
  0x2c   : > { %p1355_p0 = pnand %p1354_p12, %p1348_p1 }
  0x2e   : > { %1358 = shalt.err (!%p1355_p0)
}
  0x2f   : > { %s2055_s25 = smov 64   ;;  %s2056_s29 = smov 4  }
  0x30   : > { %1206 = dma.hbm_to_vmem [thread:$0]  (!%p1676_p11), %s2068_s2, 256, %s1669_s30, [#allocation8], %s2055_s25, %s2055_s25, %s2056_s29  }
  0x31   : > { %s2070_s3 = sld [smem:[#allocation21_spill]] }
  0x37   : > { %s1359_s12 = scalar_lea.hbm %s2070_s3, 512 }
  0x38   : > { %p1360_p1 = scmp.ne.s32.totalorder %s2070_s3, %s1359_s12  ;;  %p1366_p10 = scmp.lt.u32.totalorder %s1359_s12, %s2070_s3 }
  0x3a   : > { %p1362_p2 = pnand %p1360_p1, %p1690_p13 }
  0x3c   : > { %p1363_p6 = pneg %p1362_p2 }
  0x3e   : > { %p1368_p3 = pnand %p1366_p10, %p1363_p6 }
  0x40   : > { %1371 = shalt.err (!%p1368_p3)
}
  0x41   : > { %s1372_s30 = scalar_lea.vmem %s1680_s8, 512  ;;  %p1380_p12 = scmp.lt.s32.totalorder %s1680_s8, %s1680_s8 }
  0x42   : > { %p1373_p5 = scmp.ne.s32.totalorder %s1680_s8, %s1372_s30  ;;  %p1381_p0 = scmp.lt.s32.totalorder %s1372_s30, %s1372_s30 }
  0x44   : > { %p1375_p7 = pnand %p1373_p5, %p1690_p13  ;;  %p1382_p1 = por %p1381_p0, %p1380_p12 }
  0x46   : > { %p1376_p9 = pneg %p1375_p7 }
  0x48   : > { %p1383_p2 = pnand %p1382_p1, %p1376_p9 }
  0x4a   : > { %1386 = shalt.err (!%p1383_p2)
}
  0x4b   : > { %s1575_s7 = smov 128   ;;  %s1576_s9 = smov 8  }
  0x4c   : > { %1209 = dma.hbm_to_vmem [thread:$0]  (!%p1676_p11), %s2070_s3, 512, %s1680_s8, [#allocation11], %s1575_s7, %s1575_s7, %s1576_s9  }
  0x4d   : > { %s1577_s12 = smov [#allocation12]   ;;  %s2071_s4 = sld [smem:[#allocation22_spill]] }
  0x4e   : > { %s225_s13 = sshll.u32 %s1577_s12, 4  ;;  %s226_s13 = int_to_ptr.vmem [resolvable:$true] %s225_s13 }
  0x53   : > { %s1387_s17 = scalar_lea.hbm %s2071_s4, 256 }
  0x54   : > { %p1388_p6 = scmp.ne.s32.totalorder %s2071_s4, %s1387_s17  ;;  %p1394_p5 = scmp.lt.u32.totalorder %s1387_s17, %s2071_s4 }
  0x56   : > { %p1390_p10 = pnand %p1388_p6, %p1690_p13 }
  0x58   : > { %p1391_p3 = pneg %p1390_p10 }
  0x5a   : > { %p1396_p7 = pnand %p1394_p5, %p1391_p3 }
  0x5c   : > { %1399 = shalt.err (!%p1396_p7)
}
  0x5d   : > { %s1400_s8 = scalar_lea.vmem %s226_s13, 256  ;;  %p1408_p1 = scmp.lt.s32.totalorder %s226_s13, %s226_s13 }
  0x5e   : > { %p1401_p9 = scmp.ne.s32.totalorder %s226_s13, %s1400_s8  ;;  %p1409_p2 = scmp.lt.s32.totalorder %s1400_s8, %s1400_s8 }
  0x60   : > { %p1403_p12 = pnand %p1401_p9, %p1690_p13  ;;  %p1410_p4 = por %p1409_p2, %p1408_p1 }
  0x62   : > { %p1404_p0 = pneg %p1403_p12 }
  0x64   : > { %p1411_p8 = pnand %p1410_p4, %p1404_p0 }
  0x66   : > { %1414 = shalt.err (!%p1411_p8)
}
  0x67   : > { %s2072_s25 = smov 4   ;;  %s2073_s7 = smov 64  }
  0x68   : > { %1212 = dma.hbm_to_vmem [thread:$0]  (!%p1676_p11), %s2071_s4, 256, %s226_s13, [#allocation11], %s2073_s7, %s2073_s7, %s2072_s25  }
  0x69   : > { %s37_s14 = sadd.s32 1, %s1565_s22  ;;  %s46_s6 = sadd.s32 1, %s1557_s20 }
  0x6a   : > { %p39_p4 = scmp.ge.s32.totalorder %s37_s14, 2  ;;  %p53_p8 = scmp.ne.s32.totalorder %s1557_s20, %s1553_s19 }
  0x6b   : > { %p54_p13 = scmp.eq.s32.totalorder %s1569_s23, 0  ;;  %p2076_p10 = scmp.eq.s32.totalorder %s1646_s24, 1 }
  0x6c   : > { %s2095_s14 = smov (%p39_p4, %s37_s14), 0  ;;  %p1227_p11 = scmp.lt.s32.totalorder %s1569_s23, 2 }
  0x6d   : > { %2074 = sst [smem:[#allocation19_spill]] %s2095_s14  ;;  %p1765_p6 = por %p54_p13, %p53_p8 }
  0x6e   : > { %p1771_p3 = por %p2076_p10, %p53_p8  ;;  %s41_s11 = ssub.s32 %s1565_s22, %s2095_s14 }
  0x6f   : > { %p44_p5 = scmp.eq.s32.totalorder %s41_s11, 0  ;;  %s239_s12 = sand.u32 1, %s1557_s20  }
  0x70   : > { %s2077_s10 = scalar_select %p1771_p3, 1, 0 }
  0x71   : > { %s1779_s13 = sshll.u32 %s239_s12, 3  ;;  %s1045_s16 = sshll.u32 %s1565_s22, 7 }
  0x72   : > { %s1782_s15 = scalar_select %p44_p5, %s1557_s20, %s46_s6  }
  0x73   : > { %s1788_s8 = scalar_lea.hbm %s2048_s0, %s1045_s16  ;;  %s243_s25 = scalar_lea.vmem [#allocation4], %s1779_s13 }
  0x74   : > { %s251_s7 = sshll.u32 %s243_s25, 4  ;;  %p1795_p7 = pnand %p1227_p11, %p1765_p6  ;;  %s1791_s7 = int_to_ptr.vmem [resolvable:$true] %s251_s7 }
  0x75   : > { %s1802_s11 = scalar_lea.hbm %s2049_s1, %s1045_s16  ;;  %s258_s17 = sand.u32 1, %s1569_s23  }
  0x76   : > { %s240_s30 = scalar_lea.sflag [#allocation5], %s239_s12  ;;  %s1415_s3 = scalar_lea.hbm %s1788_s8, 128 }
  0x77   : > { %p1416_p9 = scmp.ne.s32.totalorder %s1788_s8, %s1415_s3  ;;  %p1417_p12 = pneg %p1795_p7 }
  0x78   : > { %s1420_s4 = scalar_lea.hbm %s2048_s0, 256  ;;  %p1421_p2 = scmp.lt.u32.totalorder %s1788_s8, %s2048_s0 }
  0x79   : > { %p1418_p0 = pnand %p1417_p12, %p1416_p9  ;;  %p1422_p4 = scmp.lt.u32.totalorder %s1420_s4, %s1415_s3 }
  0x7a   : > { %p1424_p13 = scmp.lt.u32.totalorder %s1415_s3, %s1788_s8 }
  0x7b   : > { %p1419_p1 = pneg %p1418_p0  ;;  %p1423_p8 = por %p1422_p4, %p1421_p2 }
  0x7d   : > { %p1425_p6 = por %p1424_p13, %p1423_p8 }
  0x7f   : > { %p1426_p10 = pnand %p1425_p6, %p1419_p1 }
  0x81   : > { %1429 = shalt.err (!%p1426_p10)
}
  0x82   : > { %s1430_s12 = scalar_lea.vmem %s1791_s7, 128  ;;  %s1578_s16 = smov [#allocation4]  }
  0x83   : > { %p1431_p11 = scmp.ne.s32.totalorder %s1791_s7, %s1430_s12  ;;  %s1435_s6 = sshll.u32 %s1578_s16, 4  ;;  %s1436_s6 = int_to_ptr.vmem [resolvable:$false] %s1435_s6 }
  0x84   : > { %s1437_s14 = scalar_lea.vmem %s1436_s6, 256  ;;  %p1438_p0 = scmp.lt.s32.totalorder %s1791_s7, %s1436_s6 }
  0x85   : > { %p1433_p5 = pnand %p1431_p11, %p1417_p12  ;;  %p1439_p2 = scmp.lt.s32.totalorder %s1437_s14, %s1430_s12 }
  0x87   : > { %p1434_p9 = pneg %p1433_p5  ;;  %p1440_p4 = por %p1439_p2, %p1438_p0 }
  0x89   : > { %p1441_p8 = pnand %p1440_p4, %p1434_p9 }
  0x8b   : > { %1444 = shalt.err (!%p1441_p8)
}
  0x8c   : > { %1216 = dma.hbm_to_vmem [thread:$0]  (!%p1795_p7), %s1788_s8, 128, %s1791_s7, %s240_s30  }
  0x8d   : > { %s262_s3 = scalar_lea.vmem [#allocation7], %s1779_s13  ;;  %s259_s9 = scalar_lea.sflag [#allocation8], %s258_s17 }
  0x8e   : > { %s269_s4 = sshll.u32 %s262_s3, 4  ;;  %s1445_s25 = scalar_lea.hbm %s1802_s11, 128  ;;  %s270_s4 = int_to_ptr.vmem [resolvable:$true] %s269_s4 }
  0x8f   : > { %p1446_p1 = scmp.ne.s32.totalorder %s1802_s11, %s1445_s25  ;;  %s1450_s16 = scalar_lea.hbm %s2049_s1, 256 }
  0x90   : > { %p1451_p10 = scmp.lt.u32.totalorder %s1802_s11, %s2049_s1  ;;  %p1452_p11 = scmp.lt.u32.totalorder %s1450_s16, %s1445_s25 }
  0x91   : > { %p1448_p13 = pnand %p1446_p1, %p1417_p12  ;;  %p1454_p9 = scmp.lt.u32.totalorder %s1445_s25, %s1802_s11 }
  0x92   : > { %p1453_p5 = por %p1452_p11, %p1451_p10 }
  0x93   : > { %p1449_p6 = pneg %p1448_p13 }
  0x94   : > { %p1455_p0 = por %p1454_p9, %p1453_p5 }
  0x96   : > { %p1456_p2 = pnand %p1455_p0, %p1449_p6 }
  0x98   : > { %1459 = shalt.err (!%p1456_p2)
}
  0x99   : > { %s1460_s13 = scalar_lea.vmem %s270_s4, 128  ;;  %s1579_s8 = smov [#allocation7]  }
  0x9a   : > { %p1461_p4 = scmp.ne.s32.totalorder %s270_s4, %s1460_s13  ;;  %s1465_s7 = sshll.u32 %s1579_s8, 4  ;;  %s1466_s7 = int_to_ptr.vmem [resolvable:$false] %s1465_s7 }
  0x9b   : > { %s1467_s17 = scalar_lea.vmem %s1466_s7, 256  ;;  %p1468_p13 = scmp.lt.s32.totalorder %s270_s4, %s1466_s7 }
  0x9c   : > { %p1463_p8 = pnand %p1461_p4, %p1417_p12  ;;  %p1469_p3 = scmp.lt.s32.totalorder %s1467_s17, %s1460_s13 }
  0x9e   : > { %p1464_p1 = pneg %p1463_p8  ;;  %p1470_p10 = por %p1469_p3, %p1468_p13 }
  0xa0   : > { %p1471_p11 = pnand %p1470_p10, %p1464_p1 }
  0xa2   : > { %1474 = shalt.err (!%p1471_p11)
}
  0xa3   : > { %1219 = dma.hbm_to_vmem [thread:$0]  (!%p1795_p7), %s1802_s11, 128, %s270_s4, %s259_s9  }
  0xa4   : > { %p2079_p6 = scmp.ne.s32.totalorder %s2066_s28, 0 }
  0xa5   : > { %s1855_s30 = sand.u32 (!%p2079_p6), 1, %s1553_s19   ;;  %p2080_p3 = scmp.ne.s32.totalorder (!%p2079_p6), %s2064_s26, 0 }
  0xa6   : > { %278 = sbr.rel (%p2079_p6) target bundleno = 1196 (0x4ac), region = 40  ;;  %s1858_s3 = sshll.u32 (!%p2079_p6), %s1855_s30, 3 }
  0xa7   : > { %s281_s25 = scalar_lea.sflag (!%p2079_p6), [#allocation5], %s1855_s30  ;;  %s284_s29 = scalar_lea.vmem (!%p2079_p6), [#allocation4], %s1858_s3 }
  0xad   : > { %1528 = dma.done.wait (%p2080_p3), %s281_s25, 128  }
  0xae   : > { %1530 = vsyncadd (%p2080_p3), %s281_s25, 4294967168  ;;  %s289_s28 = sand.u32 1, %s1646_s24   ;;  %s293_s11 = scalar_lea.vmem [#allocation7], %s1858_s3 }
  0xaf   : > { %s290_s2 = scalar_lea.sflag [#allocation8], %s289_s28 }
  0xb0   : > { %1532 = dma.done.wait (%p2080_p3), %s290_s2, 128  }
  0xb1   : > { %1534 = vsyncadd (%p2080_p3), %s290_s2, 4294967168  ;;  %p2081_p7 = scmp.eq.s32.totalorder %s1646_s24, 0 }
  0xb3   : > { %1536 = dma.done.wait (%p2081_p7), [#allocation8], 256   ;;  %p2082_p12 = pmov %p2081_p7 }
  0xb4   : > { %p2083_p5 = pmov %p2081_p7 }
  0xb5   : > { %1538 = vsyncadd (%p2082_p12), [#allocation8], 4294967040 }
  0xb6   : > { %1540 = dma.done.wait (%p2083_p5), [#allocation11], 768   ;;  %p2084_p9 = pmov %p2083_p5 }
  0xb7   : > { %v1580_v0 = vmov 0   ;;  %vm368_vm0 = vcmask 1043456   ;;  %v426_v1 = vld [vmem:[%s284_s29] sm:$0xff]  ;;  %vm361_vm1 = vcmask 64512   ;;  %v432_v4 = vld [vmem:[#allocation10] sm:$0xff]  ;;  %vm345_vm2 = vcmask 519168  }
  0xb8   : > { %1542 = vsyncadd (%p2084_p9), [#allocation11], 4294966528  ;;  %1291 = vset.pattern.permute.xlu0 %v1580_v0  ;;  %1292 = vset.pattern.permute.xlu1 %v1580_v0  ;;  %v427_v2 = vpack.c.bf16 %v426_v1, %v426_v1  ;;  %v1293_v3 = vld [vmem:[#allocation9] sm:$0xff]   ;;  %v343_v5 = vld [vmem:[%s293_s11] sm:$0xff]  ;;  %vm423_vm3 = vcmask 523264   ;;  %vm546_vm4 = vcmask 261120  }
  0xb9   : > { %1119 = vmatprep.mubr.msk.bf16.mxu1 %vm361_vm1, %v1293_v3  ;;  %v1294_v7 = vld [vmem:[#allocation9 + $0x8] sm:$0xff]   ;;  %v344_v8 = vpack.c.bf16 %v343_v5, %v343_v5  ;;  %v434_v9 = vld [vmem:[#allocation10 + $0x10] sm:$0xff]  ;;  %438 = vperm.xlu0 %1291, %v432_v4   ;;  %v1295_v10 = vld [vmem:[#allocation12] sm:$0xff]   ;;  %vm1582_vm5 = vmmov 0   ;;  %s1074_s24 = sshll.u32 %s1561_s21, 7  ;;  %s336_s26 = scalar_lea.vmem [#allocation13], %s1858_s3 }
  0xba   : > { %1184 = vmatprep.subr.msk.bf16.mxu1 %vm368_vm0, %v427_v2  ;;  %v475_v6 = vsel %vm368_vm0, %v427_v2, 0  ;;  %448 = vperm.xlu1 %1292, %v434_v9   ;;  %v433_v12 = vld [vmem:[#allocation10 + $0x8] sm:$0xff]  ;;  %v435_v14 = vld [vmem:[#allocation10 + $0x18] sm:$0xff]  ;;  %s906_s4 = sshll.u32 %s336_s26, 4  ;;  %s1999_s16 = scalar_lea.hbm %s2053_s5, %s1074_s24  ;;  %s2001_s4 = int_to_ptr.vmem [resolvable:$true] %s906_s4 }
  0xbb   : > { %1118 = vmatpush3.bf16.msra.mxu1 %v475_v6  ;;  %346 = vst.msk [vmem:[#allocation3] sm:$0xf] %vm345_vm2, %v344_v8  ;;  %1183 = vmatprep.subr.msk.bf16.mxu0 %vm368_vm0, %v344_v8  ;;  %v370_v11 = vsel %vm368_vm0, %v344_v8, 0  ;;  %v1296_v13 = vld [vmem:[#allocation12 + $0x8] sm:$0xff]   ;;  %s892_s6 = scalar_lea.sflag [#allocation6], %s1855_s30  ;;  %s1475_s14 = scalar_lea.vmem %s2001_s4, 128 }
  0xbc   : > { %1112 = vmatpush3.bf16.msra.mxu0 %v370_v11  ;;  %1113 = vmatprep.mubr.msk.bf16.mxu0 %vm361_vm1, %v1295_v10  ;;  %v1581_v10 = vmov 0.0   ;;  %p1476_p0 = scmp.ne.s32.totalorder %s2001_s4, %s1475_s14  ;;  %p2085_p2 = scmp.ne.s32.totalorder %s2077_s10, 0 }
  0xbd   : > { %443 = vperm.xlu0 %1291, %v433_v12   ;;  %1143 = vmatprep.subr.bf16.mxu1 %v1581_v10  ;;  %s1584_s21 = smov [#allocation13]  }
  0xbe   : > { %1120 = vmatmul.mubr.msk.bf16.vlgmr.msra.gmra.mrb[0].mxu1 %vm361_vm1, %v1294_v7  ;;  %453 = vperm.xlu1 %1292, %v435_v14   ;;  %p1477_p4 = pnand %p1476_p0, %p2085_p2  ;;  %s1479_s13 = sshll.u32 %s1584_s21, 4  ;;  %s1480_s13 = int_to_ptr.vmem [resolvable:$false] %s1479_s13 }
  0xbf   : > { %1114 = vmatmul.mubr.msk.bf16.vlgmr.msra.gmra.mrb[0].mxu0 %vm361_vm1, %v1296_v13  ;;  %1159 = vmatprep.mubr.msk.bf16.mxu1 %vm1582_vm5, %v1581_v10  ;;  %s1481_s8 = scalar_lea.vmem %s1480_s13, 256  ;;  %p1482_p1 = scmp.lt.s32.totalorder %s2001_s4, %s1480_s13 }
  0xc0   : > { %p1478_p8 = pneg %p1477_p4  ;;  %p1483_p13 = scmp.lt.s32.totalorder %s1481_s8, %s1475_s14 }
  0xc2   : > { %p1484_p10 = por %p1483_p13, %p1482_p1 }
  0xc4   : > { %p1485_p11 = pnand %p1484_p10, %p1478_p8 }
 0x138   : > { %v439_v16 = vpop.permute.xlu0 %438 }
 0x139   : > { %v449_v15 = vpop.permute.xlu1 %448 }
 0x13c   : > { %v444_v19 = vpop.permute.xlu0 %443 }
 0x13d   : > { %v454_v18 = vpop.permute.xlu1 %453 }
 0x191   : > { %v1121_v17 = vpop.f32.mrb[0].mxu1 }
 0x192   : > { %v511_v20 = vpop.f32.mrb[1].mxu1  ;;  %v1115_v22 = vpop.f32.mrb[0].mxu0  ;;  %v520_v23 = vadd.f32 %v1121_v17, %v449_v15 }
 0x193   : > { %v1122_v21 = vpop.f32.mrb[2].mxu1  ;;  %v406_v26 = vpop.f32.mrb[1].mxu0  ;;  %v512_v27 = vadd.f32 %v511_v20, %v439_v16 }
 0x194   : > { %v523_v24 = vadd.f32 %v1122_v21, %v454_v18  ;;  %v514_v25 = vpop.f32.mrb[3].mxu1  ;;  %v1116_v29 = vpop.f32.mrb[2].mxu0 }
 0x195   : > { %v515_v28 = vadd.f32 %v514_v25, %v444_v19  ;;  %v422_v31 = vpack.c.bf16 %v1116_v29, %v1115_v22  ;;  %v409_v32 = vpop.f32.mrb[3].mxu0 }
 0x196   : > { %v527_v30 = vpack.c.bf16 %v523_v24, %v520_v23  ;;  %v421_v34 = vpack.c.bf16 %v409_v32, %v406_v26 }
 0x197   : > { %v526_v33 = vpack.c.bf16 %v515_v28, %v512_v27  ;;  %425 = vst.msk [vmem:[#allocation2 + $0x8] sm:$0xff] %vm423_vm3, %v422_v31 }
 0x198   : > { %424 = vst.msk [vmem:[#allocation2] sm:$0xff] %vm423_vm3, %v421_v34 }
 0x199   : > { %530 = vxpose.xlu0.c.b16.start [1/2] (short) %v526_v33, 128 }
 0x19d   : > { %531 = vxpose.xlu0.c.b16.end [2/2] (short) %v527_v30, 128 }
 0x19e   : > { %v529_v36 = vld [vmem:[#allocation2 + $0x8] sm:$0xff] }
 0x19f   : > { %v528_v35 = vld [vmem:[#allocation2] sm:$0xff] }
 0x1a0   : > { %1123 = vmatprep.subr.bf16.mxu0 %v528_v35 }
 0x1a1   : > { %1124 = vmatpush3.bf16.msra.mxu0 %v528_v35 }
 0x1a2   : > { %1125 = vmatprep.subr.bf16.mxu0 %v529_v36 }
 0x1a5   : > { %1126 = vmatpush3.bf16.msra.mxu0 %v529_v36 }
 0x1a6   : > { %1163 = vmatprep.subr.bf16.mxu0 %v1581_v10 }
 0x1ff   : > { %v538_v37 = vpop.trf.xlu0 }
 0x200   : > { %1127 = vmatprep.mubr.msk.bf16.mxu0 %vm546_vm4, %v538_v37 }
 0x203   : > { %v539_v38 = vpop.trf.xlu0 }
 0x204   : > { %1128 = vmatmul.mubr.msk.bf16.vlgmr.msra.gmra.mrb[4].mxu0 %vm546_vm4, %v539_v38 }
 0x207   : > { %v540_v39 = vpop.trf.xlu0 }
 0x208   : > { %1131 = vmatprep.mubr.msk.bf16.mxu0 %vm546_vm4, %v540_v39 }
 0x20b   : > { %v541_v40 = vpop.trf.xlu0 }
 0x20c   : > { %1132 = vmatmul.mubr.msk.bf16.gmra.mrb[8].mxu0 %vm546_vm4, %v541_v40 }
 0x20f   : > { %v542_v41 = vpop.trf.xlu0 }
 0x210   : > { %1135 = vmatprep.mubr.msk.bf16.mxu0 %vm546_vm4, %v542_v41 }
 0x213   : > { %v543_v42 = vpop.trf.xlu0 }
 0x214   : > { %1136 = vmatmul.mubr.msk.bf16.gmra.mrb[12].mxu0 %vm546_vm4, %v543_v42 }
 0x217   : > { %v544_v43 = vpop.trf.xlu0 }
 0x218   : > { %1139 = vmatprep.mubr.msk.bf16.mxu0 %vm546_vm4, %v544_v43 }
 0x21b   : > { %v545_v44 = vpop.trf.xlu0 }
 0x21c   : > { %1140 = vmatmul.mubr.msk.bf16.gmra.mrb[16].mxu0 %vm546_vm4, %v545_v44 }
 0x21d   : > { %1179 = vmatprep.mubr.msk.bf16.mxu0 %vm1582_vm5, %v1581_v10 }
 0x2d7   : > { %v1898_v45 = vpop.f32.mrb[4].mxu0 }
 0x2d8   : > { %v605_v46 = vpop.f32.mrb[5].mxu0  ;;  %v675_v51 = vsel %vm423_vm3, %v1898_v45, -inf }
 0x2d9   : > { %v1900_v47 = vpop.f32.mrb[6].mxu0  ;;  %v669_v48 = vsel %vm423_vm3, %v605_v46, -inf }
 0x2da   : > { %670 = vmax.xlane.f32.xlu1 %v669_v48  ;;  %v608_v49 = vpop.f32.mrb[7].mxu0  ;;  %v678_v54 = vsel %vm423_vm3, %v1900_v47, -inf }
 0x2db   : > { %v672_v50 = vsel %vm423_vm3, %v608_v49, -inf }
 0x2dc   : > { %673 = vmax.xlane.f32.xlu0 %v672_v50 }
 0x2de   : > { %676 = vmax.xlane.f32.xlu1 %v675_v51 }
 0x2df   : > { %v1906_v52 = vpop.f32.mrb[8].mxu0 }
 0x2e0   : > { %v621_v53 = vpop.f32.mrb[9].mxu0  ;;  %v687_v0 = vsel %vm423_vm3, %v1906_v52, -inf }
 0x2e1   : > { %v1910_v55 = vpop.f32.mrb[10].mxu0  ;;  %v681_v57 = vsel %vm423_vm3, %v621_v53, -inf }
 0x2e2   : > { %679 = vmax.xlane.f32.xlu1 %v678_v54  ;;  %v1912_v56 = vpop.f32.mrb[11].mxu0  ;;  %v690_v4 = vsel %vm423_vm3, %v1910_v55, -inf }
 0x2e3   : > { %v684_v61 = vsel %vm423_vm3, %v1912_v56, -inf }
 0x2e6   : > { %682 = vmax.xlane.f32.xlu1 %v681_v57 }
 0x2e7   : > { %v1915_v58 = vpop.f32.mrb[12].mxu0 }
 0x2e8   : > { %v1917_v59 = vpop.f32.mrb[13].mxu0  ;;  %v699_v11 = vsel %vm423_vm3, %v1915_v58, -inf }
 0x2e9   : > { %v1919_v60 = vpop.f32.mrb[14].mxu0  ;;  %v693_v7 = vsel %vm423_vm3, %v1917_v59, -inf }
 0x2ea   : > { %685 = vmax.xlane.f32.xlu1 %v684_v61  ;;  %v702_v62 = vsel %vm423_vm3, %v1919_v60, -inf  ;;  %v1925_v63 = vpop.f32.mrb[15].mxu0 }
 0x2eb   : > { %703 = vmax.xlane.f32.xlu0 %v702_v62  ;;  %v696_v9 = vsel %vm423_vm3, %v1925_v63, -inf }
 0x2ee   : > { %688 = vmax.xlane.f32.xlu1 %v687_v0 }
 0x2ef   : > { %v1929_v1 = vpop.f32.mrb[16].mxu0 }
 0x2f0   : > { %v1931_v2 = vpop.f32.mrb[17].mxu0  ;;  %v711_v13 = vsel %vm423_vm3, %v1929_v1, -inf }
 0x2f1   : > { %v1933_v3 = vpop.f32.mrb[18].mxu0  ;;  %v705_v12 = vsel %vm423_vm3, %v1931_v2, -inf }
 0x2f2   : > { %691 = vmax.xlane.f32.xlu1 %v690_v4  ;;  %v1937_v5 = vpop.f32.mrb[19].mxu0  ;;  %v714_v8 = vsel %vm423_vm3, %v1933_v3, -inf }
 0x2f3   : > { %v708_v6 = vsel %vm423_vm3, %v1937_v5, -inf }
 0x2f4   : > { %709 = vmax.xlane.f32.xlu0 %v708_v6 }
 0x2f6   : > { %694 = vmax.xlane.f32.xlu1 %v693_v7 }
 0x2f8   : > { %715 = vmax.xlane.f32.xlu0 %v714_v8 }
 0x2fa   : > { %697 = vmax.xlane.f32.xlu1 %v696_v9 }
 0x2fe   : > { %700 = vmax.xlane.f32.xlu1 %v699_v11 }
 0x302   : > { %706 = vmax.xlane.f32.xlu1 %v705_v12 }
 0x306   : > { %712 = vmax.xlane.f32.xlu1 %v711_v13 }
 0x367   : > { %v671_v14 = vpop.xlane.xlu1 %670 }
 0x368   : > { %v717_v15 = vsub.f32 %v605_v46, %v671_v14 }
 0x369   : > { %v674_v16 = vpop.xlane.xlu0 %673 }
 0x36a   : > { %v733_v17 = vmul.f32 1.442695, %v717_v15  ;;  %v718_v18 = vsub.f32 %v608_v49, %v674_v16 }
 0x36b   : > { %v677_v19 = vpop.xlane.xlu1 %676 }
 0x36c   : > { %v735_v20 = vmul.f32 1.442695, %v718_v18  ;;  %v719_v21 = vsub.f32 %v1898_v45, %v677_v19  ;;  %1297 = vpow2.f32 %v733_v17 }
 0x36e   : > { %1299 = vpow2.f32 %v735_v20  ;;  %v737_v22 = vmul.f32 1.442695, %v719_v21 }
 0x36f   : > { %v680_v23 = vpop.xlane.xlu1 %679 }
 0x370   : > { %v720_v24 = vsub.f32 %v1900_v47, %v680_v23  ;;  %1301 = vpow2.f32 %v737_v22 }
 0x372   : > { %v739_v25 = vmul.f32 1.442695, %v720_v24 }
 0x373   : > { %v683_v26 = vpop.xlane.xlu1 %682 }
 0x374   : > { %1303 = vpow2.f32 %v739_v25  ;;  %v721_v27 = vsub.f32 %v621_v53, %v683_v26 }
 0x376   : > { %v1298_v28 = vpop.eup %1297  ;;  %v741_v29 = vmul.f32 1.442695, %v721_v27 }
 0x377   : > { %v686_v30 = vpop.xlane.xlu1 %685 }
 0x378   : > { %v1300_v31 = vpop.eup %1299  ;;  %v722_v32 = vsub.f32 %v1912_v56, %v686_v30  ;;  %1305 = vpow2.f32 %v741_v29  ;;  %v704_v44 = vpop.xlane.xlu0 %703 }
 0x379   : > { %v765_v33 = vpack.c.bf16 %v1300_v31, %v1298_v28  ;;  %v840_v31 = vld [vmem:[#allocation3] sm:$0xf] }
 0x37a   : > { %v743_v34 = vmul.f32 1.442695, %v722_v32  ;;  %v1302_v38 = vpop.eup %1301  ;;  %v1583_v32 = vmov 1065369472  }
 0x37b   : > { %v689_v35 = vpop.xlane.xlu1 %688  ;;  %v777_v36 = vsel %vm423_vm3, %v765_v33, 0 }
 0x37c   : > { %1307 = vpow2.f32 %v743_v34  ;;  %v723_v37 = vsub.f32 %v1906_v52, %v689_v35  ;;  %1144 = vmatpush3.bf16.xpose.msra.mxu1 %v777_v36  ;;  %1164 = vmatpush3.bf16.xpose.msra.mxu0 %v777_v36  ;;  %v728_v52 = vsub.f32 %v1919_v60, %v704_v44  ;;  %v885_v35 = vlaneseq }
 0x37d   : > { %1145 = vmatprep.subr.bf16.mxu1 %v1581_v10  ;;  %1165 = vmatprep.subr.bf16.mxu0 %v1581_v10 }
 0x37e   : > { %v1304_v39 = vpop.eup %1303  ;;  %v745_v40 = vmul.f32 1.442695, %v723_v37  ;;  %v755_v61 = vmul.f32 1.442695, %v728_v52 }
 0x37f   : > { %v692_v41 = vpop.xlane.xlu1 %691  ;;  %v766_v42 = vpack.c.bf16 %v1304_v39, %v1302_v38 }
 0x380   : > { %v724_v43 = vsub.f32 %v1910_v55, %v692_v41  ;;  %1309 = vpow2.f32 %v745_v40  ;;  %v886_v41 = vshrl.u32 %v885_v35, 7 }
 0x381   : > { %v780_v47 = vsel %vm423_vm3, %v766_v42, 0  ;;  %v710_v51 = vpop.xlane.xlu0 %709 }
 0x382   : > { %v747_v45 = vmul.f32 1.442695, %v724_v43  ;;  %v1306_v49 = vpop.eup %1305  ;;  %v887_v42 = vsub.s32 0, %v886_v41 }
 0x383   : > { %v695_v46 = vpop.xlane.xlu1 %694 }
 0x384   : > { %1311 = vpow2.f32 %v747_v45  ;;  %v725_v48 = vsub.f32 %v1917_v59, %v695_v46  ;;  %1146 = vmatpush3.bf16.xpose.msra.mxu1 %v780_v47  ;;  %1166 = vmatpush3.bf16.xpose.msra.mxu0 %v780_v47  ;;  %v730_v59 = vsub.f32 %v1937_v5, %v710_v51 }
 0x385   : > { %1147 = vmatprep.subr.bf16.mxu1 %v1581_v10  ;;  %1167 = vmatprep.subr.bf16.mxu0 %v1581_v10  ;;  %v716_v4 = vpop.xlane.xlu0 %715 }
 0x386   : > { %v1308_v50 = vpop.eup %1307  ;;  %v749_v53 = vmul.f32 1.442695, %v725_v48  ;;  %v759_v8 = vmul.f32 1.442695, %v730_v59  ;;  %v732_v5 = vsub.f32 %v1933_v3, %v716_v4 }
 0x387   : > { %v698_v54 = vpop.xlane.xlu1 %697  ;;  %v767_v55 = vpack.c.bf16 %v1308_v50, %v1306_v49 }
 0x388   : > { %v726_v56 = vsub.f32 %v1925_v63, %v698_v54  ;;  %1313 = vpow2.f32 %v749_v53 }
 0x389   : > { %v783_v0 = vsel %vm423_vm3, %v767_v55, 0 }
 0x38a   : > { %v751_v57 = vmul.f32 1.442695, %v726_v56  ;;  %v1310_v60 = vpop.eup %1309 }
 0x38b   : > { %v701_v62 = vpop.xlane.xlu1 %700 }
 0x38c   : > { %1315 = vpow2.f32 %v751_v57  ;;  %v727_v6 = vsub.f32 %v1915_v58, %v701_v62  ;;  %1148 = vmatpush3.bf16.xpose.msra.mxu1 %v783_v0  ;;  %1168 = vmatpush3.bf16.xpose.msra.mxu0 %v783_v0  ;;  %v763_v58 = vmul.f32 1.442695, %v732_v5 }
 0x38d   : > { %1149 = vmatprep.subr.bf16.mxu1 %v1581_v10  ;;  %1169 = vmatprep.subr.bf16.mxu0 %v1581_v10  ;;  %1317 = vpow2.f32 %v755_v61 }
 0x38e   : > { %v1312_v63 = vpop.eup %1311  ;;  %v753_v7 = vmul.f32 1.442695, %v727_v6 }
 0x38f   : > { %v707_v9 = vpop.xlane.xlu1 %706  ;;  %v768_v11 = vpack.c.bf16 %v1312_v63, %v1310_v60 }
 0x390   : > { %1319 = vpow2.f32 %v753_v7  ;;  %v729_v12 = vsub.f32 %v1931_v2, %v707_v9 }
 0x391   : > { %1321 = vpow2.f32 %v759_v8  ;;  %v786_v15 = vsel %vm423_vm3, %v768_v11, 0 }
 0x392   : > { %v757_v13 = vmul.f32 1.442695, %v729_v12  ;;  %v1314_v17 = vpop.eup %1313 }
 0x393   : > { %v713_v14 = vpop.xlane.xlu1 %712 }
 0x394   : > { %1323 = vpow2.f32 %v757_v13  ;;  %v731_v16 = vsub.f32 %v1929_v1, %v713_v14  ;;  %1150 = vmatpush3.bf16.xpose.msra.mxu1 %v786_v15  ;;  %1170 = vmatpush3.bf16.xpose.msra.mxu0 %v786_v15 }
 0x395   : > { %1151 = vmatprep.subr.bf16.mxu1 %v1581_v10  ;;  %1171 = vmatprep.subr.bf16.mxu0 %v1581_v10  ;;  %1325 = vpow2.f32 %v763_v58 }
 0x396   : > { %v1316_v3 = vpop.eup %1315  ;;  %v761_v18 = vmul.f32 1.442695, %v731_v16 }
 0x397   : > { %v769_v2 = vpack.c.bf16 %v1316_v3, %v1314_v17  ;;  %v1318_v19 = vpop.eup %1317 }
 0x398   : > { %1327 = vpow2.f32 %v761_v18 }
 0x399   : > { %v789_v21 = vsel %vm423_vm3, %v769_v2, 0 }
 0x39a   : > { %v1320_v20 = vpop.eup %1319 }
 0x39b   : > { %v770_v22 = vpack.c.bf16 %v1318_v19, %v1320_v20  ;;  %v1322_v1 = vpop.eup %1321 }
 0x39c   : > { %1152 = vmatpush3.bf16.xpose.msra.mxu1 %v789_v21  ;;  %1172 = vmatpush3.bf16.xpose.msra.mxu0 %v789_v21 }
 0x39d   : > { %1153 = vmatprep.subr.bf16.mxu1 %v1581_v10  ;;  %1173 = vmatprep.subr.bf16.mxu0 %v1581_v10  ;;  %v792_v27 = vsel %vm423_vm3, %v770_v22, 0 }
 0x39e   : > { %v1324_v23 = vpop.eup %1323 }
 0x39f   : > { %v771_v24 = vpack.c.bf16 %v1322_v1, %v1324_v23  ;;  %v1326_v25 = vpop.eup %1325 }
 0x3a1   : > { %v795_v29 = vsel %vm423_vm3, %v771_v24, 0 }
 0x3a2   : > { %v1328_v26 = vpop.eup %1327 }
 0x3a3   : > { %v772_v28 = vpack.c.bf16 %v1326_v25, %v1328_v26 }
 0x3a4   : > { %1154 = vmatpush3.bf16.xpose.msra.mxu1 %v792_v27  ;;  %1174 = vmatpush3.bf16.xpose.msra.mxu0 %v792_v27 }
 0x3a5   : > { %1155 = vmatprep.subr.bf16.mxu1 %v1581_v10  ;;  %1175 = vmatprep.subr.bf16.mxu0 %v1581_v10  ;;  %v798_v30 = vsel %vm423_vm3, %v772_v28, 0 }
 0x3ac   : > { %1156 = vmatpush3.bf16.xpose.msra.mxu1 %v795_v29  ;;  %1176 = vmatpush3.bf16.xpose.msra.mxu0 %v795_v29 }
 0x3ad   : > { %1157 = vmatprep.subr.bf16.mxu1 %v1581_v10  ;;  %1177 = vmatprep.subr.bf16.mxu0 %v1581_v10 }
 0x3b4   : > { %1158 = vmatpush3.bf16.xpose.msra.mxu1 %v798_v30  ;;  %1178 = vmatpush3.bf16.xpose.msra.mxu0 %v798_v30 }
 0x3bb   : > { %1160 = vmatmul.mubr.msk.bf16.vlgmr.msra.gmra.mrb[4].mxu1 %vm423_vm3, %v1583_v32  ;;  %1180 = vmatmul.mubr.msk.bf16.vlgmr.msra.gmra.mrb[20].mxu0 %vm423_vm3, %v840_v31 }
 0x48e   : > { %v834_v33 = vpop.f32.mrb[4].mxu1  ;;  %v878_v34 = vpop.f32.mrb[20].mxu0 }
 0x48f   : > { %1329 = vrcp.f32 %v834_v33  ;;  %v1161_v36 = vpop.f32.mrb[5].mxu1  ;;  %v1181_v37 = vpop.f32.mrb[21].mxu0 }
 0x490   : > { %v837_v10 = vpop.f32.mrb[6].mxu1  ;;  %v881_v38 = vpop.f32.mrb[22].mxu0 }
 0x491   : > { %v1162_v39 = vpop.f32.mrb[7].mxu1  ;;  %v1182_v40 = vpop.f32.mrb[23].mxu0 }
 0x499   : > { %v1330_v43 = vpop.eup %1329 }
 0x49a   : > { %v888_v44 = vrot.slane %v1330_v43, %v887_v42 }
 0x49c   : > { %v889_v45 = vmul.f32 %v888_v44, %v878_v34 }
 0x49e   : > { %890 = vst [vmem:[%s336_s26] sm:$0xff] %v889_v45 }
 0x49f   : > { %1488 = shalt.err (!%p1485_p11)
}
 0x4a0   : > { %s1489_s7 = scalar_lea.hbm %s1999_s16, 128  ;;  %s1493_s3 = scalar_lea.hbm %s2053_s5, 256 }
 0x4a1   : > { %p1490_p6 = scmp.ne.s32.totalorder %s1999_s16, %s1489_s7  ;;  %p1494_p12 = scmp.lt.u32.totalorder %s1999_s16, %s2053_s5 }
 0x4a2   : > { %p1495_p5 = scmp.lt.u32.totalorder %s1493_s3, %s1489_s7  ;;  %p1497_p0 = scmp.lt.u32.totalorder %s1489_s7, %s1999_s16 }
 0x4a3   : > { %p1491_p3 = pnand %p1490_p6, %p2085_p2 }
 0x4a4   : > { %p1496_p9 = por %p1495_p5, %p1494_p12 }
 0x4a5   : > { %p1492_p7 = pneg %p1491_p3 }
 0x4a6   : > { %p1498_p4 = por %p1497_p0, %p1496_p9 }
 0x4a8   : > { %p1499_p8 = pnand %p1498_p4, %p1492_p7 }
 0x4aa   : > { %1502 = shalt.err (!%p1499_p8)
}
 0x4ab   : > { %1201 = dma.vmem_to_hbm [thread:$0]  (%p2085_p2), %s2001_s4, 128, %s1999_s16, %s892_s6  }
 0x4ac PF: > { %s918_s28 = sand.u32 1, %s1549_s18   ;;  %p2086_p1 = scmp.ne.s32.totalorder %s2065_s27, 0 }
 0x4ad   : > { %p2087_p13 = scmp.ge.s32.totalorder %s1569_s23, 2  ;;  %s919_s2 = scalar_lea.sflag [#allocation6], %s918_s28 }
 0x4af   : > { %p1221_p10 = pnand %p2087_p13, %p2086_p1 }
 0x4b1   : > { %1544 = dma.done.wait (!%p1221_p10), %s919_s2, 128  }
 0x4b2   : > { %1546 = vsyncadd (!%p1221_p10), %s919_s2, 4294967168  ;;  %s25_s23 = sadd.s32 1, %s1569_s23   ;;  %s2088_s10 = sld [smem:[#allocation19_spill]] }
 0x4b3   : > { %p22_p11 = scmp.ge.s32.totalorder %s25_s23, 4   ;;  %s2089_s18 = smov %s1553_s19 }
 0x4b4   : > { %s2090_s19 = smov %s1557_s20  ;;  %s2091_s20 = smov %s1782_s15 }
 0x4b5   : > { %s2092_s21 = smov %s1565_s22  ;;  %24 = sbr.rel (!%p22_p11) target bundleno = 13 (0xd), region = 114 }
 0x4b8   : > { %s2093_s22 = smov %s2088_s10 }
 0x4bc   :  { %924 = vsyncpa [#allocation5], 1 }
 0x4bd   :  { %926 = vsyncpa [#allocation5 + $0x1], 1 }
 0x4be   :  { %927 = vsyncpa [#allocation8], 1 }
 0x4bf   :  { %929 = vsyncpa [#allocation8 + $0x1], 1 }
 0x4c0   :  { %930 = vsyncpa [#allocation11], 1 }
 0x4c1   :  { %931 = vsyncpa [#allocation6], 1 }
 0x4c2   :  { %933 = vsyncpa [#allocation6 + $0x1], 1 }

</bundles_post_ra>
